<compile_context>
chip_gen: v7x
topology: tpu7x:2x2x1
jax: 0.10.0
libtpu: 0.0.40
codegen_flags: <defaults>
</compile_context>

<pallas_src>
import jax
import jax.numpy as jnp
from jax.experimental import pallas as pl
from jax.experimental.pallas import tpu as pltpu


_LANE = 128


def _round_up(x, m):
    return ((x + m - 1) // m) * m


def _tile_budget_bytes():
    """Per-output-tile VMEM budget, generation aware (defensive fallback)."""
    try:
        kind = jax.devices()[0].device_kind.lower()
    except Exception:
        return 8 << 20
    if "v5" in kind:
        return 4 << 20      # ~820 GB/s: 4 MiB already drowns step overhead
    if "v7" in kind:
        return 12 << 20     # 64 MiB VMEM: 2x12 MiB double-buffered is safe
    return 8 << 20          # v6e and others


def _choose_spatial_tile(nclasses, s, itemsize, n_batch):
    """Equal-sized lane-multiple spatial tiles, sized by the VMEM budget."""
    s_lanes = _round_up(s, _LANE)
    budget = _tile_budget_bytes()
    # Largest lane-multiple S_t keeping one (C, S_t) output block under budget.
    s_t_max = max(_LANE, (budget // max(1, nclasses * itemsize)) // _LANE * _LANE)
    # Tile-count-first: equal-sized tiles bound tail waste to <= 127 lanes.
    num_tiles = max(1, pl.cdiv(s_lanes, s_t_max))
    # v7x megacore: make sure the (batch x spatial) grid has >= 2 steps so
    # both TensorCores get work (no effect on single-TC v5e/v6e).
    if n_batch * num_tiles < 2:
        num_tiles = min(2, max(1, s_lanes // _LANE))
    s_t = _round_up(pl.cdiv(s_lanes, num_tiles), _LANE)
    return s_t


def _onehot_kernel(x_ref, o_ref):
    # x_ref: (1, 1, S_t) int32 labels
    # o_ref: (1, C, S_t)  one-hot output tile
    labels = x_ref[...]                                   # (1, 1, S_t)
    _, nclasses, _ = o_ref.shape
    # (1, C, 1) class ids along the sublane axis; the compare broadcasts it
    # across lanes, so no full (C, S_t) iota is materialized.
    class_ids = jax.lax.broadcasted_iota(jnp.int32, (1, nclasses, 1), 1)
    o_ref[...] = (labels == class_ids).astype(o_ref.dtype)


def _one_hot_flat(x_flat, nclasses, out_dtype=jnp.float32):
    """x_flat: (N, S) int labels -> (N, nclasses, S) one-hot of out_dtype."""
    n, s = x_flat.shape
    x_flat = x_flat.astype(jnp.int32)
    itemsize = jnp.dtype(out_dtype).itemsize

    s_t = _choose_spatial_tile(nclasses, s, itemsize, n)

    # (N, 1, S): the label block's sublane dim equals the full array dim, so
    # the BlockSpec satisfies the (8, 128) tiling constraint for any N; the
    # lane axis uses S_t (multiple of 128) with Pallas masking the ragged
    # tail block (out-of-bounds reads are unused, writes are dropped).
    x3 = x_flat.reshape(n, 1, s)

    grid = (n, pl.cdiv(s, s_t))
    cost = pl.CostEstimate(
        flops=0,
        transcendentals=0,
        bytes_accessed=n * s * 4 + n * nclasses * s * itemsize,
    )
    # Double-buffered output + input tiles, plus slack.
    vmem_limit = min(
        48 << 20,
        max(16 << 20, 2 * nclasses * s_t * itemsize + 2 * s_t * 4 + (1 << 20)),
    )

    out = pl.pallas_call(
        _onehot_kernel,
        out_shape=jax.ShapeDtypeStruct((n, nclasses, s), out_dtype),
        grid_spec=pltpu.PrefetchScalarGridSpec(
            num_scalar_prefetch=0,
            grid=grid,
            in_specs=[pl.BlockSpec((1, 1, s_t), lambda i, j: (i, 0, j))],
            out_specs=pl.BlockSpec((1, nclasses, s_t), lambda i, j: (i, 0, j)),
        ),
        compiler_params=pltpu.CompilerParams(
            dimension_semantics=("parallel", "parallel"),
            vmem_limit_bytes=vmem_limit),
        cost_estimate=cost,
    )(x3)
    return out


def one_hot_2d_spatial(x, nclasses, out_dtype=jnp.float32):
    """Pallas equivalent of oneHot.onehot2dspatial."""
    remove_dim = False
    if x.ndim == 2:
        x = x[None, ...]
        remove_dim = True
    assert x.ndim == 3, "expected (N, H, W) or (H, W) labels"
    n, h, w = x.shape
    out = _one_hot_flat(x.reshape(n, h * w), nclasses, out_dtype)
    out = out.reshape(n, nclasses, h, w)
    if remove_dim:
        out = out[0]
    return out


def one_hot_1d_spatial(x, nclasses, out_dtype=jnp.float32):
    """Pallas equivalent of oneHot.onehot1dspatial."""
    remove_dim = False
    if x.ndim == 1:
        x = x[None, ...]
        remove_dim = True
    assert x.ndim == 2, "expected (N, B) or (B,) labels"
    out = _one_hot_flat(x, nclasses, out_dtype)        # (N, C, B)
    if remove_dim:
        out = out[0]
    return out


class OneHot:
    """Mirror of the PyTorch oneHot module (device arg irrelevant on TPU)."""

    def __init__(self, nclasses, spatial_dim=2, out_dtype=jnp.float32):
        self.nclasses = nclasses
        self.spatial_dim = spatial_dim
        self.out_dtype = out_dtype

    def __call__(self, x):
        if self.spatial_dim == 1:
            return one_hot_1d_spatial(x, self.nclasses, self.out_dtype)
        elif self.spatial_dim == 2:
            return one_hot_2d_spatial(x, self.nclasses, self.out_dtype)
        raise ValueError("spatial_dim must be 1 or 2")


if __name__ == "__main__":
    key = jax.random.PRNGKey(0)
    nclasses = 8

    # --- 2D spatial path (S = H*W multiple of 128, unmasked stores) ---
    N, H, W = 2, 16, 16
    k0, k1, k2 = jax.random.split(key, 3)
    x2d = jax.random.randint(k0, (N, H, W), minval=0, maxval=nclasses,
                             dtype=jnp.int32)
    mod = OneHot(nclasses=nclasses, spatial_dim=2)
    out2d = jax.block_until_ready(mod(x2d))
    ref2d = jnp.transpose(jax.nn.one_hot(x2d, nclasses, dtype=jnp.float32),
                          (0, 3, 1, 2))
    assert out2d.shape == (N, nclasses, H, W)
    assert out2d.dtype == jnp.float32
    assert jnp.array_equal(out2d, ref2d)

    # --- 2D spatial path with ragged S (exercises the masked-tail block) ---
    Hr, Wr = 10, 13
    x2dr = jax.random.randint(k1, (N, Hr, Wr), minval=0, maxval=nclasses,
                              dtype=jnp.int32)
    out2dr = jax.block_until_ready(mod(x2dr))
    ref2dr = jnp.transpose(jax.nn.one_hot(x2dr, nclasses, dtype=jnp.float32),
                           (0, 3, 1, 2))
    assert out2dr.shape == (N, nclasses, Hr, Wr)
    assert jnp.array_equal(out2dr, ref2dr)

    # --- 1D spatial path (B < 128, single masked tile per batch row) ---
    B = 40
    x1d = jax.random.randint(k2, (N, B), minval=0, maxval=nclasses,
                             dtype=jnp.int32)
    mod1 = OneHot(nclasses=nclasses, spatial_dim=1)
    out1d = jax.block_until_ready(mod1(x1d))
    ref1d = jnp.transpose(jax.nn.one_hot(x1d, nclasses, dtype=jnp.float32),
                          (0, 2, 1))
    assert out1d.shape == (N, nclasses, B)
    assert jnp.array_equal(out1d, ref1d)

    print("KERNEL_OK")
</pallas_src>

<mosaic_0001>
module attributes {stable_mosaic.version = 11 : i64} {
  func.func @_onehot_kernel(%arg0: i32, %arg1: i32, %arg2: memref<1x1x256xi32, #tpu.memory_space<vmem>>, %arg3: memref<1x8x256xf32, #tpu.memory_space<vmem>>) attributes {dimension_semantics = [#tpu.dimension_semantics<parallel>, #tpu.dimension_semantics<parallel>], iteration_bounds = array<i64: 2, 1>, scalar_prefetch = 0 : i64, scratch_operands = 0 : i64, tpu.core_type = #tpu.core_type<tc>, window_params = [{transform_indices = @transform_0, window_bounds = array<i64: 1, 1, 256>}, {transform_indices = @transform_1, window_bounds = array<i64: 1, 8, 256>}]} {
    %c0 = arith.constant 0 : index
    %c0_0 = arith.constant 0 : index
    %c0_1 = arith.constant 0 : index
    %0 = vector.load %arg2[%c0, %c0_0, %c0_1] : memref<1x1x256xi32, #tpu.memory_space<vmem>>, vector<1x1x256xi32>
    %1 = tpu.iota {dimensions = array<i32: 1>} : vector<1x8x1xi32>
    %2 = vector.broadcast %0 : vector<1x1x256xi32> to vector<1x8x256xi32>
    %3 = vector.broadcast %1 : vector<1x8x1xi32> to vector<1x8x256xi32>
    %4 = arith.cmpi eq, %2, %3 : vector<1x8x256xi32>
    %5 = arith.extui %4 : vector<1x8x256xi1> to vector<1x8x256xi32>
    %6 = arith.sitofp %5 : vector<1x8x256xi32> to vector<1x8x256xf32>
    %c0_2 = arith.constant 0 : index
    %c0_3 = arith.constant 0 : index
    %c0_4 = arith.constant 0 : index
    %7 = vector.load %arg3[%c0_2, %c0_3, %c0_4] : memref<1x8x256xf32, #tpu.memory_space<vmem>>, vector<1x8x256xf32>
    tpu.vector_store %arg3[%c0_2, %c0_3, %c0_4], %6 {strides = array<i32>} : memref<1x8x256xf32, #tpu.memory_space<vmem>>, vector<1x8x256xf32>,
    return
  }
  func.func @transform_0(%arg0: i32, %arg1: i32) -> (i32, i32, i32) {
    %c0_i32 = arith.constant 0 : i32
    %c0_i32_0 = arith.constant 0 : i32
    return %arg0, %c0_i32, %arg1 : i32, i32, i32
  }
  func.func @transform_1(%arg0: i32, %arg1: i32) -> (i32, i32, i32) {
    %c0_i32 = arith.constant 0 : i32
    %c0_i32_0 = arith.constant 0 : i32
    return %arg0, %c0_i32, %arg1 : i32, i32, i32
  }
}

</mosaic_0001>

<bundles_post_ra>
// kernel: tpu_custom_call.1
= control target key start
LH: loop header
LB: loop body
LE: loop exit
PB: predicated region body
PF: predicated region fallthrough
CT: control target
= control target key end

     0   :  { %6 = vsyncpa [#allocation3], 0  ;;  %s655_s0 = inlined_call_operand.hbm [shape: s32[2,1,256], index: 0, kind: input, shape index: {}]   ;;  %s656_s1 = inlined_call_operand.hbm [shape: f32[2,8,256], index: 1, kind: output, shape index: {}]  }
   0x1   :  { %8 = vsyncpa [#allocation3 + $0x1], 0 }
   0x2   :  { %9 = vsyncpa [#allocation4], 0 }
   0x3   :  { %11 = vsyncpa [#allocation4 + $0x1], 0  ;;  %s482_s6 = smov 0   ;;  %s484_s7 = smov 0  }
   0x4   :  { %s486_s8 = smov 0   ;;  %s488_s9 = smov 0  }
   0x5   :  { %s490_s10 = smov 0   ;;  %s492_s11 = smov 0  }
   0x6 LB: > { %s273_s12 = sadd.s32 4294967295, %s467_s11   ;;  %s274_s13 = sadd.s32 4294967294, %s467_s11   ;;  %s467_s11 = sphi %s492_s11, %s17_s11   ;;  %s463_s10 = sphi %s490_s10, %s672_s10   ;;  %s459_s9 = sphi %s488_s9, %s671_s9   ;;  %s455_s8 = sphi %s486_s8, %s670_s8   ;;  %s451_s7 = sphi %s484_s7, %s669_s7   ;;  %s447_s6 = sphi %s482_s6, %s668_s6  }
   0x7   : > { %s29_s14 = sadd.s32 1, %s463_s10  ;;  %s38_s15 = sadd.s32 1, %s455_s8 }
   0x8   : > { %p31_p0 = scmp.ge.s32.totalorder %s29_s14, 2  ;;  %p45_p1 = scmp.ne.s32.totalorder %s455_s8, %s451_s7 }
   0x9   : > { %p46_p2 = scmp.eq.s32.totalorder %s467_s11, 0  ;;  %p51_p3 = scmp.ne.s32.totalorder %s451_s7, %s447_s6 }
   0xa   : > { %s674_s14 = smov (%p31_p0, %s29_s14), 0  ;;  %p52_p5 = scmp.eq.s32.totalorder %s273_s12, 0 }
   0xb   : > { %p523_p4 = por %p46_p2, %p45_p1  ;;  %s33_s17 = ssub.s32 %s463_s10, %s674_s14 }
   0xc   : > { %p77_p6 = scmp.eq.s32.totalorder %s273_s12, 1  ;;  %p36_p7 = scmp.eq.s32.totalorder %s33_s17, 0 }
   0xd   : > { %p529_p8 = por %p52_p5, %p51_p3  ;;  %p83_p10 = scmp.eq.s32.totalorder %s274_s13, 1 }
   0xe   : > { %p533_p9 = por %p77_p6, %p45_p1  ;;  %p304_p13 = scmp.lt.s32.totalorder %s467_s11, 2 }
   0xf   : > { %s538_s20 = scalar_select %p36_p7, %s455_s8, %s38_s15  }
  0x10   : > { %s660_s19 = scalar_select %p533_p9, 1, 0 }
  0x11   : > { %p540_p11 = por %p83_p10, %p51_p3  ;;  %s103_s22 = sand.u32 1, %s455_s8  }
  0x12   : > { %s277_s23 = sshll.u32 %s103_s22, 1  ;;  %s290_s24 = sshll.u32 %s463_s10, 5 }
  0x13   : > { %s661_s21 = scalar_select %p540_p11, 1, 0 }
  0x14   : > { %s551_s27 = scalar_lea.hbm %s655_s0, %s290_s24  ;;  %s107_s28 = scalar_lea.vmem [#allocation2], %s277_s23 }
  0x15   : > { %s117_s29 = sshll.u32 %s107_s28, 4  ;;  %p557_p0 = pnand %p304_p13, %p523_p4  ;;  %s553_s29 = int_to_ptr.vmem [resolvable:$true] %s117_s29 }
  0x16   : > { %s104_s2 = scalar_lea.sflag [#allocation3], %s103_s22  ;;  %s355_s3 = scalar_lea.hbm %s551_s27, 32 }
  0x17   : > { %p356_p3 = scmp.ne.s32.totalorder %s551_s27, %s355_s3  ;;  %p357_p5 = pneg %p557_p0 }
  0x18   : > { %s360_s12 = scalar_lea.hbm %s655_s0, 64  ;;  %p361_p4 = scmp.lt.u32.totalorder %s551_s27, %s655_s0 }
  0x19   : > { %p358_p6 = pnand %p357_p5, %p356_p3  ;;  %p362_p10 = scmp.lt.u32.totalorder %s360_s12, %s355_s3 }
  0x1a   : > { %p364_p12 = scmp.lt.u32.totalorder %s355_s3, %s551_s27 }
  0x1b   : > { %p359_p7 = pneg %p358_p6  ;;  %p363_p13 = por %p362_p10, %p361_p4 }
  0x1d   : > { %p365_p1 = por %p364_p12, %p363_p13 }
  0x1f   : > { %p366_p2 = pnand %p365_p1, %p359_p7 }
  0x21   : > { %369 = shalt.err (!%p366_p2)
}
  0x22   : > { %s370_s16 = scalar_lea.vmem %s553_s29, 32  ;;  %s469_s17 = smov [#allocation2]  }
  0x23   : > { %p371_p3 = scmp.ne.s32.totalorder %s553_s29, %s370_s16  ;;  %s375_s22 = sshll.u32 %s469_s17, 4  ;;  %s376_s22 = int_to_ptr.vmem [resolvable:$false] %s375_s22 }
  0x24   : > { %s377_s23 = scalar_lea.vmem %s376_s22, 64  ;;  %p378_p9 = scmp.lt.s32.totalorder %s553_s29, %s376_s22 }
  0x25   : > { %p373_p6 = pnand %p371_p3, %p357_p5  ;;  %p379_p4 = scmp.lt.s32.totalorder %s377_s23, %s370_s16 }
  0x27   : > { %p374_p11 = pneg %p373_p6  ;;  %p380_p10 = por %p379_p4, %p378_p9 }
  0x29   : > { %p381_p12 = pnand %p380_p10, %p374_p11 }
  0x2b   : > { %384 = shalt.err (!%p381_p12)
}
  0x2c   : > { %299 = dma.hbm_to_vmem [thread:$0]  (!%p557_p0), %s551_s27, 32, %s553_s29, %s104_s2  }
  0x2d   : > { %p663_p1 = scmp.lt.s32.totalorder %s467_s11, 3  ;;  %p664_p2 = scmp.ge.s32.totalorder %s467_s11, 1 }
  0x2f   : > { %p123_p5 = pnand %p664_p2, %p663_p1 }
  0x30   : > { %s593_s24 = sand.u32 (!%p123_p5), 1, %s451_s7  }
  0x31   : > { %126 = sbr.rel (%p123_p5) target bundleno = 83 (0x53), region = 24  ;;  %s281_s25 = sshll.u32 (!%p123_p5), %s593_s24, 1 }
  0x32   : > { %s129_s26 = scalar_lea.sflag (!%p123_p5), [#allocation3], %s593_s24  ;;  %s132_s28 = scalar_lea.vmem (!%p123_p5), [#allocation2], %s281_s25 }
  0x38   : > { %438 = dma.done.wait (%p529_p8), %s129_s26, 32  }
  0x39   : > { %440 = vsyncadd (%p529_p8), %s129_s26, 4294967264  ;;  %v154_v0 = vlaneseq  ;;  %s282_s27 = sshll.u32 %s593_s24, 4  ;;  %v153_v4 = vld [vmem:[%s132_s28] sm:$0x3]  ;;  %s291_s2 = sshll.u32 %s459_s9, 8  ;;  %v470_v7 = vmov 0.0  }
  0x3a   : > { %s150_s29 = scalar_lea.vmem [#allocation5], %s282_s27  ;;  %s608_s4 = scalar_lea.hbm %s656_s1, %s291_s2 }
  0x3b   : > { %v155_v1 = vshrl.u32 %v154_v0, 7  ;;  %s189_s30 = sshll.u32 %s150_s29, 4  ;;  %s173_s9 = scalar_lea.sflag [#allocation4], %s593_s24  ;;  %s603_s30 = int_to_ptr.vmem [resolvable:$true] %s189_s30 }
  0x3c   : > { %s385_s5 = scalar_lea.vmem %s603_s30, 256  ;;  %p665_p9 = scmp.ne.s32.totalorder %s660_s19, 0 }
  0x3d   : > { %v158_v2 = vsub.s32 0, %v155_v1  ;;  %v162_v3 = vsub.s32 1, %v155_v1  ;;  %p386_p8 = scmp.ne.s32.totalorder %s603_s30, %s385_s5  ;;  %s471_s12 = smov [#allocation5]  }
  0x3e   : > { %s389_s13 = sshll.u32 %s471_s12, 4  ;;  %s390_s13 = int_to_ptr.vmem [resolvable:$false] %s389_s13 }
  0x3f   : > { %v159_v5 = vrot.slane %v153_v4, %v158_v2  ;;  %v163_v6 = vrot.slane %v153_v4, %v162_v3  ;;  %p387_p11 = pnand %p386_p8, %p665_p9  ;;  %s391_s15 = scalar_lea.vmem %s390_s13, 512 }
  0x40   : > { %p392_p7 = scmp.lt.s32.totalorder %s603_s30, %s390_s13  ;;  %p393_p13 = scmp.lt.s32.totalorder %s391_s15, %s385_s5 }
  0x41   : > { %vm164_vm0 = vcmp.eq.s32.totalorder %v159_v5, %v155_v1  ;;  %vm165_vm1 = vcmp.eq.s32.totalorder %v163_v6, %v155_v1  ;;  %p388_p0 = pneg %p387_p11 }
  0x42   : > { %v283_v8 = vsel %vm164_vm0, 1.0, %v470_v7  ;;  %v284_v9 = vsel %vm165_vm1, 1.0, %v470_v7  ;;  %p394_p3 = por %p393_p13, %p392_p7 }
  0x43   : > { %170 = vst [vmem:[%s150_s29] sm:$0xff] %v283_v8  ;;  %171 = vst [vmem:[%s150_s29 + $0x8] sm:$0xff] %v284_v9 }
  0x44   : > { %p395_p6 = pnand %p394_p3, %p388_p0 }
  0x46   : > { %398 = shalt.err (!%p395_p6)
}
  0x47   : > { %s399_s16 = scalar_lea.hbm %s608_s4, 256  ;;  %s403_s23 = scalar_lea.hbm %s656_s1, 512 }
  0x48   : > { %p400_p4 = scmp.ne.s32.totalorder %s608_s4, %s399_s16  ;;  %p404_p1 = scmp.lt.u32.totalorder %s608_s4, %s656_s1 }
  0x49   : > { %p405_p2 = scmp.lt.u32.totalorder %s403_s23, %s399_s16  ;;  %p407_p8 = scmp.lt.u32.totalorder %s399_s16, %s608_s4 }
  0x4a   : > { %p401_p10 = pnand %p400_p4, %p665_p9 }
  0x4b   : > { %p406_p5 = por %p405_p2, %p404_p1 }
  0x4c   : > { %p402_p12 = pneg %p401_p10 }
  0x4d   : > { %p408_p11 = por %p407_p8, %p406_p5 }
  0x4f   : > { %p409_p0 = pnand %p408_p11, %p402_p12 }
  0x51   : > { %412 = shalt.err (!%p409_p0)
}
  0x52   : > { %294 = dma.vmem_to_hbm [thread:$0]  (%p665_p9), %s603_s30, 256, %s608_s4, %s173_s9  }
  0x53 PF: > { %s201_s26 = sand.u32 1, %s447_s6   ;;  %p666_p7 = scmp.ne.s32.totalorder %s661_s21, 0 }
  0x54   : > { %p667_p13 = scmp.ge.s32.totalorder %s467_s11, 2  ;;  %s202_s28 = scalar_lea.sflag [#allocation4], %s201_s26 }
  0x56   : > { %p301_p3 = pnand %p667_p13, %p666_p7 }
  0x58   : > { %442 = dma.done.wait (!%p301_p3), %s202_s28, 256  }
  0x59   : > { %444 = vsyncadd (!%p301_p3), %s202_s28, 4294967040  ;;  %s17_s11 = sadd.s32 1, %s467_s11   ;;  %s668_s6 = smov %s451_s7 }
  0x5a   : > { %p14_p6 = scmp.ge.s32.totalorder %s17_s11, 4   ;;  %s669_s7 = smov %s455_s8 }
  0x5b   : > { %s670_s8 = smov %s538_s20  ;;  %s671_s9 = smov %s463_s10 }
  0x5c   : > { %s672_s10 = smov %s674_s14  ;;  %16 = sbr.rel (!%p14_p6) target bundleno = 6 (0x6), region = 69 }
  0x63   :  { %207 = vsyncpa [#allocation3], 1 }
  0x64   :  { %209 = vsyncpa [#allocation3 + $0x1], 1 }
  0x65   :  { %210 = vsyncpa [#allocation4], 1 }
  0x66   :  { %212 = vsyncpa [#allocation4 + $0x1], 1 }

</bundles_post_ra>
